<compile_context>
chip_gen: v5e
topology: v5e:2x2
jax: 0.10.0
libtpu: 0.0.40
codegen_flags: <defaults>
</compile_context>

<pallas_src>
import jax
import jax.numpy as jnp
from jax.experimental import pallas as pl
from jax.experimental.pallas import tpu as pltpu

HIDDEN = 128
SUBLANE = 8     # TPU sublane width (second-to-last-dim tile)


def _round_up(x, m):
    return ((x + m - 1) // m) * m


def dqn_kernel(x_ref, w1_ref, b1_ref, w2_ref, b2_ref, w3_ref, b3_ref, out_ref):
    # Fused 3-layer MLP forward for one batch tile.
    # bf16 MXU matmuls, f32 accumulation, f32 bias/ReLU, f32 output.
    h1 = jnp.dot(x_ref[...], w1_ref[...], preferred_element_type=jnp.float32) + b1_ref[...]
    h1 = jnp.maximum(h1, 0.0).astype(w2_ref.dtype)
    h2 = jnp.dot(h1, w2_ref[...], preferred_element_type=jnp.float32) + b2_ref[...]
    h2 = jnp.maximum(h2, 0.0).astype(w3_ref.dtype)
    q = jnp.dot(h2, w3_ref[...], preferred_element_type=jnp.float32) + b3_ref[...]
    out_ref[...] = q.astype(out_ref.dtype)


def dqn_forward(x, params, tile_b=512):
    """x: (B, n_observations) f32.  params: dict from init_params.  Returns (B, n_actions) f32."""
    B, n_obs = x.shape
    assert n_obs == params["n_observations"]
    n_act = params["n_actions"]
    n_act_pad = params["w3"].shape[1]      # n_actions rounded up to a multiple of 8

    # --- minimal-padding batch tiling ---------------------------------------
    n_tiles = pl.cdiv(B, tile_b)
    if B > SUBLANE and n_tiles < 2:
        n_tiles = 2                         # keep both v7x TensorCores busy
    if n_tiles > 1 and n_tiles % 2 == 1:
        n_tiles += 1                        # even step count -> balanced megacore split
    tb = _round_up(pl.cdiv(B, n_tiles), SUBLANE)
    b_pad = n_tiles * tb                    # <= B + 7*n_tiles rows of padding

    # Pad batch only (obs dim stays at its natural width) and cast to bf16 for the MXU.
    x_pad = jnp.pad(x, ((0, b_pad - B), (0, 0))).astype(jnp.bfloat16)

    const = lambda i: (0, 0)      # weights/biases: same block every step -> VMEM-resident
    batched = lambda i: (i, 0)    # x / out: streamed along the batch grid axis

    out = pl.pallas_call(
        dqn_kernel,
        out_shape=jax.ShapeDtypeStruct((b_pad, n_act_pad), jnp.float32),
        grid_spec=pltpu.PrefetchScalarGridSpec(
            num_scalar_prefetch=0,
            grid=(n_tiles,),
            in_specs=[
                pl.BlockSpec((tb, n_obs), batched),           # x      (bf16)
                pl.BlockSpec((n_obs, HIDDEN), const),         # w1     (bf16)
                pl.BlockSpec((1, HIDDEN), const),             # b1     (f32)
                pl.BlockSpec((HIDDEN, HIDDEN), const),        # w2     (bf16)
                pl.BlockSpec((1, HIDDEN), const),             # b2     (f32)
                pl.BlockSpec((HIDDEN, n_act_pad), const),     # w3     (bf16, zero-padded cols)
                pl.BlockSpec((1, n_act_pad), const),          # b3     (f32,  zero-padded)
            ],
            out_specs=pl.BlockSpec((tb, n_act_pad), batched),
        ),
        compiler_params=pltpu.CompilerParams(
            dimension_semantics=("parallel",),                # megacore sharding on v7x
        ),
    )(x_pad, params["w1"], params["b1"], params["w2"], params["b2"],
      params["w3"], params["b3"])

    return out[:B, :n_act]


def init_params(key, n_observations, n_actions):
    """nn.Linear-style init (uniform(-1/sqrt(fan_in), 1/sqrt(fan_in))), stored transposed.
    Weights in bf16 (MXU inputs), biases in f32.  Layer-3 output dim zero-padded to a
    multiple of 8 so the output block is a legal, narrow (tb, 8) tile."""
    ks = jax.random.split(key, 6)
    n_act_pad = _round_up(max(n_actions, SUBLANE), SUBLANE)

    def lin(kw, kb, fan_in, fan_out, fan_out_pad):
        bound = float(fan_in) ** -0.5
        w = jax.random.uniform(kw, (fan_in, fan_out), jnp.float32, -bound, bound)
        b = jax.random.uniform(kb, (1, fan_out), jnp.float32, -bound, bound)
        w = jnp.pad(w, ((0, 0), (0, fan_out_pad - fan_out)))   # zero cols contribute nothing
        b = jnp.pad(b, ((0, 0), (0, fan_out_pad - fan_out)))
        return w.astype(jnp.bfloat16), b  # bf16 matmul inputs, f32 bias

    w1, b1 = lin(ks[0], ks[1], n_observations, HIDDEN, HIDDEN)
    w2, b2 = lin(ks[2], ks[3], HIDDEN, HIDDEN, HIDDEN)
    w3, b3 = lin(ks[4], ks[5], HIDDEN, n_actions, n_act_pad)
    return dict(w1=w1, b1=b1, w2=w2, b2=b2, w3=w3, b3=b3,
                n_observations=n_observations, n_actions=n_actions)


def _reference(x, params):
    """Pure-f32 reference (weights upcast from bf16)."""
    n_act = params["n_actions"]
    w1 = params["w1"].astype(jnp.float32)
    w2 = params["w2"].astype(jnp.float32)
    w3 = params["w3"].astype(jnp.float32)[:, :n_act]
    b3 = params["b3"][:, :n_act]
    h1 = jax.nn.relu(x @ w1 + params["b1"])
    h2 = jax.nn.relu(h1 @ w2 + params["b2"])
    return h2 @ w3 + b3


if __name__ == "__main__":
    key = jax.random.PRNGKey(0)
    k_param, k_x, k_x2 = jax.random.split(key, 3)

    n_observations = 4   # e.g. CartPole observation size
    n_actions = 2        # e.g. CartPole action space
    params = init_params(k_param, n_observations, n_actions)

    # Small case (matches the toy spec): batch=2 -> single 8-row tile.
    x = jax.random.normal(k_x, (2, n_observations), jnp.float32)
    q = jax.block_until_ready(dqn_forward(x, params))
    assert q.shape == (2, n_actions)
    assert jnp.allclose(q, _reference(x, params), atol=2e-2, rtol=2e-2)

    # Larger, ragged batch: exercises minimal-pad tiling (2 x 152 rows) and the batch grid.
    x_big = jax.random.normal(k_x2, (300, n_observations), jnp.float32)
    q_big = jax.block_until_ready(dqn_forward(x_big, params))
    assert q_big.shape == (300, n_actions)
    assert jnp.allclose(q_big, _reference(x_big, params), atol=2e-2, rtol=2e-2)

    print("KERNEL_OK")
</pallas_src>

<mosaic_0001>
module attributes {stable_mosaic.version = 11 : i64} {
  func.func @dqn_kernel(%arg0: i32, %arg1: memref<8x4xbf16, #tpu.memory_space<vmem>>, %arg2: memref<4x128xbf16, #tpu.memory_space<vmem>>, %arg3: memref<1x128xf32, #tpu.memory_space<vmem>>, %arg4: memref<128x128xbf16, #tpu.memory_space<vmem>>, %arg5: memref<1x128xf32, #tpu.memory_space<vmem>>, %arg6: memref<128x8xbf16, #tpu.memory_space<vmem>>, %arg7: memref<1x8xf32, #tpu.memory_space<vmem>>, %arg8: memref<8x8xf32, #tpu.memory_space<vmem>>) attributes {dimension_semantics = [#tpu.dimension_semantics<parallel>], iteration_bounds = array<i64: 1>, scalar_prefetch = 0 : i64, scratch_operands = 0 : i64, tpu.core_type = #tpu.core_type<tc>, window_params = [{transform_indices = @transform_0, window_bounds = array<i64: 8, 4>}, {pipeline_mode = #tpu.pipeline_mode<synchronous>, transform_indices = @transform_1, window_bounds = array<i64: 4, 128>}, {pipeline_mode = #tpu.pipeline_mode<synchronous>, transform_indices = @transform_2, window_bounds = array<i64: 1, 128>}, {pipeline_mode = #tpu.pipeline_mode<synchronous>, transform_indices = @transform_3, window_bounds = array<i64: 128, 128>}, {pipeline_mode = #tpu.pipeline_mode<synchronous>, transform_indices = @transform_4, window_bounds = array<i64: 1, 128>}, {pipeline_mode = #tpu.pipeline_mode<synchronous>, transform_indices = @transform_5, window_bounds = array<i64: 128, 8>}, {pipeline_mode = #tpu.pipeline_mode<synchronous>, transform_indices = @transform_6, window_bounds = array<i64: 1, 8>}, {transform_indices = @transform_7, window_bounds = array<i64: 8, 8>}]} {
    %c0 = arith.constant 0 : index
    %c0_0 = arith.constant 0 : index
    %0 = vector.load %arg1[%c0, %c0_0] : memref<8x4xbf16, #tpu.memory_space<vmem>>, vector<8x4xbf16>
    %c0_1 = arith.constant 0 : index
    %c0_2 = arith.constant 0 : index
    %1 = vector.load %arg2[%c0_1, %c0_2] : memref<4x128xbf16, #tpu.memory_space<vmem>>, vector<4x128xbf16>
    %cst = arith.constant dense<0.000000e+00> : vector<8x128xf32>
    %2 = tpu.matmul %0, %1, %cst {dimension_numbers = #tpu.dot_dimension_numbers<[1], [0], [0], [1], [0, 0, 1, 1], [], []>} : vector<8x4xbf16>, vector<4x128xbf16>, vector<8x128xf32> -> vector<8x128xf32>
    %c0_3 = arith.constant 0 : index
    %c0_4 = arith.constant 0 : index
    %3 = vector.load %arg3[%c0_3, %c0_4] : memref<1x128xf32, #tpu.memory_space<vmem>>, vector<1x128xf32>
    %4 = vector.broadcast %3 : vector<1x128xf32> to vector<8x128xf32>
    %5 = arith.addf %2, %4 : vector<8x128xf32>
    %cst_5 = arith.constant 0.000000e+00 : f32
    %6 = vector.broadcast %cst_5 : f32 to vector<8x128xf32>
    %7 = arith.maximumf %5, %6 : vector<8x128xf32>
    %8 = arith.truncf %7 : vector<8x128xf32> to vector<8x128xbf16>
    %c0_6 = arith.constant 0 : index
    %c0_7 = arith.constant 0 : index
    %9 = vector.load %arg4[%c0_6, %c0_7] : memref<128x128xbf16, #tpu.memory_space<vmem>>, vector<128x128xbf16>
    %cst_8 = arith.constant dense<0.000000e+00> : vector<8x128xf32>
    %10 = tpu.matmul %8, %9, %cst_8 {dimension_numbers = #tpu.dot_dimension_numbers<[1], [0], [0], [1], [0, 0, 1, 1], [], []>} : vector<8x128xbf16>, vector<128x128xbf16>, vector<8x128xf32> -> vector<8x128xf32>
    %c0_9 = arith.constant 0 : index
    %c0_10 = arith.constant 0 : index
    %11 = vector.load %arg5[%c0_9, %c0_10] : memref<1x128xf32, #tpu.memory_space<vmem>>, vector<1x128xf32>
    %12 = vector.broadcast %11 : vector<1x128xf32> to vector<8x128xf32>
    %13 = arith.addf %10, %12 : vector<8x128xf32>
    %cst_11 = arith.constant 0.000000e+00 : f32
    %14 = vector.broadcast %cst_11 : f32 to vector<8x128xf32>
    %15 = arith.maximumf %13, %14 : vector<8x128xf32>
    %16 = arith.truncf %15 : vector<8x128xf32> to vector<8x128xbf16>
    %c0_12 = arith.constant 0 : index
    %c0_13 = arith.constant 0 : index
    %17 = vector.load %arg6[%c0_12, %c0_13] : memref<128x8xbf16, #tpu.memory_space<vmem>>, vector<128x8xbf16>
    %cst_14 = arith.constant dense<0.000000e+00> : vector<8x8xf32>
    %18 = tpu.matmul %16, %17, %cst_14 {dimension_numbers = #tpu.dot_dimension_numbers<[1], [0], [0], [1], [0, 0, 1, 1], [], []>} : vector<8x128xbf16>, vector<128x8xbf16>, vector<8x8xf32> -> vector<8x8xf32>
    %c0_15 = arith.constant 0 : index
    %c0_16 = arith.constant 0 : index
    %19 = vector.load %arg7[%c0_15, %c0_16] : memref<1x8xf32, #tpu.memory_space<vmem>>, vector<1x8xf32>
    %20 = vector.broadcast %19 : vector<1x8xf32> to vector<8x8xf32>
    %21 = arith.addf %18, %20 : vector<8x8xf32>
    %c0_17 = arith.constant 0 : index
    %c0_18 = arith.constant 0 : index
    %22 = vector.load %arg8[%c0_17, %c0_18] : memref<8x8xf32, #tpu.memory_space<vmem>>, vector<8x8xf32>
    tpu.vector_store %arg8[%c0_17, %c0_18], %21 {strides = array<i32>} : memref<8x8xf32, #tpu.memory_space<vmem>>, vector<8x8xf32>,
    return
  }
  func.func @transform_0(%arg0: i32) -> (i32, i32) {
    %c0_i32 = arith.constant 0 : i32
    %c0_i32_0 = arith.constant 0 : i32
    return %arg0, %c0_i32 : i32, i32
  }
  func.func @transform_1(%arg0: i32) -> (i32, i32) {
    %c0_i32 = arith.constant 0 : i32
    %c0_i32_0 = arith.constant 0 : i32
    %c0_i32_1 = arith.constant 0 : i32
    return %c0_i32, %c0_i32_0 : i32, i32
  }
  func.func @transform_2(%arg0: i32) -> (i32, i32) {
    %c0_i32 = arith.constant 0 : i32
    %c0_i32_0 = arith.constant 0 : i32
    %c0_i32_1 = arith.constant 0 : i32
    return %c0_i32, %c0_i32_0 : i32, i32
  }
  func.func @transform_3(%arg0: i32) -> (i32, i32) {
    %c0_i32 = arith.constant 0 : i32
    %c0_i32_0 = arith.constant 0 : i32
    %c0_i32_1 = arith.constant 0 : i32
    return %c0_i32, %c0_i32_0 : i32, i32
  }
  func.func @transform_4(%arg0: i32) -> (i32, i32) {
    %c0_i32 = arith.constant 0 : i32
    %c0_i32_0 = arith.constant 0 : i32
    %c0_i32_1 = arith.constant 0 : i32
    return %c0_i32, %c0_i32_0 : i32, i32
  }
  func.func @transform_5(%arg0: i32) -> (i32, i32) {
    %c0_i32 = arith.constant 0 : i32
    %c0_i32_0 = arith.constant 0 : i32
    %c0_i32_1 = arith.constant 0 : i32
    return %c0_i32, %c0_i32_0 : i32, i32
  }
  func.func @transform_6(%arg0: i32) -> (i32, i32) {
    %c0_i32 = arith.constant 0 : i32
    %c0_i32_0 = arith.constant 0 : i32
    %c0_i32_1 = arith.constant 0 : i32
    return %c0_i32, %c0_i32_0 : i32, i32
  }
  func.func @transform_7(%arg0: i32) -> (i32, i32) {
    %c0_i32 = arith.constant 0 : i32
    %c0_i32_0 = arith.constant 0 : i32
    return %arg0, %c0_i32 : i32, i32
  }
}

</mosaic_0001>

<bundles_post_ra>
// kernel: tpu_custom_call.1
= control target key start
LH: loop header
LB: loop body
LE: loop exit
PB: predicated region body
PF: predicated region fallthrough
CT: control target
= control target key end

     0   :  { %vm38_vm0 = vcmask 1041408   ;;  %vm34_vm1 = vcmask 31744   ;;  %s457_s0 = inlined_call_operand.vmem [shape: bf16[8,4], index: 0, kind: input, shape index: {}]   ;;  %s458_s1 = inlined_call_operand.vmem [shape: bf16[4,128], index: 1, kind: input, shape index: {}]   ;;  %s459_s2 = inlined_call_operand.vmem [shape: f32[1,128], index: 2, kind: input, shape index: {}]   ;;  %s460_s3 = inlined_call_operand.vmem [shape: bf16[128,128], index: 3, kind: input, shape index: {}]   ;;  %s461_s4 = inlined_call_operand.vmem [shape: f32[1,128], index: 4, kind: input, shape index: {}]   ;;  %s462_s5 = inlined_call_operand.vmem [shape: bf16[128,8], index: 5, kind: input, shape index: {}]   ;;  %s463_s6 = inlined_call_operand.vmem [shape: f32[1,8], index: 6, kind: input, shape index: {}]   ;;  %s464_s7 = inlined_call_operand.hbm [shape: f32[8,8], index: 7, kind: output, shape index: {}]  }
   0x1   :  { %v29_v0 = vld [vmem:[%s458_s1] sm:$0x3]  ;;  %v311_v2 = vld [vmem:[%s460_s3 + $0x38] sm:$0xff]  ;;  %v310_v4 = vld [vmem:[%s460_s3 + $0x30] sm:$0xff] }
   0x2   :  { %v40_v1 = vsel %vm38_vm0, %v29_v0, 0  ;;  %v28_v3 = vld [vmem:[%s457_s0] sm:$0xf]  ;;  %125 = vmatpush.bf16.msra.mxu1 %v311_v2 }
   0x3   :  { %49 = vmatpush.bf16.msra.mxu0 %v40_v1 }
   0x4   :  { %12 = vsyncpa [#allocation3], 0  ;;  %v309_v5 = vld [vmem:[%s460_s3 + $0x28] sm:$0xff]  ;;  %v308_v6 = vld [vmem:[%s460_s3 + $0x20] sm:$0xff]  ;;  %s350_s14 = smov [#allocation2]   ;;  %vm221_vm2 = vcmask 64512  }
   0x5   :  { %v307_v7 = vld [vmem:[%s460_s3 + $0x18] sm:$0xff]  ;;  %v306_v8 = vld [vmem:[%s460_s3 + $0x10] sm:$0xff]  ;;  %v305_v9 = vld [vmem:[%s460_s3 + $0x8] sm:$0xff]  ;;  %s228_s15 = sshll.u32 %s350_s14, 4  ;;  %s229_s15 = int_to_ptr.vmem [resolvable:$true] %s228_s15 }
   0x6   :  { %239 = vmatmul.msk.bf16.vlgmr.msra.gmra.mxu0 %vm34_vm1, %v28_v3  ;;  %126 = vmatpush.bf16.msra.mxu1 %v310_v4  ;;  %v304_v10 = vld [vmem:[%s460_s3] sm:$0xff]  ;;  %v319_v11 = vld [vmem:[%s462_s5 + $0x38] sm:$0xff]  ;;  %v318_v12 = vld [vmem:[%s462_s5 + $0x30] sm:$0xff] }
   0x7   :  { %208 = vmatpush.bf16.msra.mxu2 %v319_v11  ;;  %v317_v13 = vld [vmem:[%s462_s5 + $0x28] sm:$0xff]  ;;  %v316_v14 = vld [vmem:[%s462_s5 + $0x20] sm:$0xff]  ;;  %v315_v15 = vld [vmem:[%s462_s5 + $0x18] sm:$0xff] }
   0x8   :  { %v314_v16 = vld [vmem:[%s462_s5 + $0x10] sm:$0xff]  ;;  %v321_v17 = vld [vmem:[%s459_s2] ss:$0 sm:$0xff]  ;;  %v313_v23 = vld [vmem:[%s462_s5 + $0x8] sm:$0xff] }
   0x9   :  { %v312_v24 = vld [vmem:[%s462_s5] sm:$0xff]  ;;  %s230_s5 = sshll.u32 %s464_s7, 4  ;;  %s231_s5 = int_to_ptr.hbm [resolvable:$true] %s230_s5 }
   0xa   :  { %127 = vmatpush.bf16.msra.mxu1 %v309_v5  ;;  %v322_v25 = vld [vmem:[%s461_s4] ss:$0 sm:$0xff] }
   0xb   :  { %209 = vmatpush.bf16.msra.mxu2 %v318_v12  ;;  %v323_v31 = vld [vmem:[%s463_s6] ss:$0 sm:$0xff] }
   0xe   :  { %128 = vmatpush.bf16.msra.mxu1 %v308_v6 }
   0xf   :  { %210 = vmatpush.bf16.msra.mxu2 %v317_v13 }
  0x12   :  { %129 = vmatpush.bf16.msra.mxu1 %v307_v7 }
  0x13   :  { %211 = vmatpush.bf16.msra.mxu2 %v316_v14 }
  0x16   :  { %130 = vmatpush.bf16.msra.mxu1 %v306_v8 }
  0x17   :  { %212 = vmatpush.bf16.msra.mxu2 %v315_v15 }
  0x1a   :  { %131 = vmatpush.bf16.msra.mxu1 %v305_v9 }
  0x1b   :  { %213 = vmatpush.bf16.msra.mxu2 %v314_v16 }
  0x1e   :  { %132 = vmatpush.bf16.msra.mxu1 %v304_v10 }
  0x1f   :  { %214 = vmatpush.bf16.msra.mxu2 %v313_v23 }
  0x23   :  { %215 = vmatpush.bf16.msra.mxu2 %v312_v24 }
  0x83   :  { %v51_v18 = vpop.f32.mrf.mxu0 }
  0x84   :  { %v52_v19 = vadd.f32 %v321_v17, %v51_v18 }
  0x86   :  { %v55_v20 = vmax.f32 %v52_v19, 0.0 }
  0x88   :  { %v56_v21 = vpack.c.bf16 %v55_v20, %v55_v20 }
  0x8a   :  { %133 = vmatmul.bf16.vlgmr.msra.gmra.mxu1 %v56_v21 }
  0x8b   :  { %v53_v22 = vpop.f32.mrf.mxu0 }
 0x107   :  { %v134_v26 = vpop.f32.mrf.mxu1 }
 0x108   :  { %v135_v27 = vadd.f32 %v322_v25, %v134_v26 }
 0x10a   :  { %v138_v28 = vmax.f32 %v135_v27, 0.0 }
 0x10c   :  { %v139_v29 = vpack.c.bf16 %v138_v28, %v138_v28 }
 0x10e   :  { %216 = vmatmul.bf16.vlgmr.msra.gmra.mxu2 %v139_v29 }
 0x10f   :  { %v136_v30 = vpop.f32.mrf.mxu1 }
 0x191   :  { %v217_v32 = vpop.f32.mrf.mxu2 }
 0x192   :  { %v218_v33 = vadd.f32 %v323_v31, %v217_v32 }
 0x194   :  { %222 = vst.msk [vmem:[#allocation2] sm:$0xff] %vm221_vm2, %v218_v33 }
 0x195   :  { %233 = dma.vmem_to_hbm [thread:$0]  %s229_s15, 128, %s231_s5, [#allocation3]  }
 0x199   :  { %v219_v34 = vpop.f32.mrf.mxu2 }
 0x19a   :  { %348 = dma.done.wait [#allocation3], 128  }
 0x19b   :  { %349 = vsyncadd [#allocation3], 4294967168 }
 0x19c   :  { %238 = vsyncpa [#allocation3], 1 }

</bundles_post_ra>
